<compile_context>
chip_gen: v6e
topology: v6e:2x2x1
jax: 0.10.0
libtpu: 0.0.40
codegen_flags: <defaults>
</compile_context>

<pallas_src>
import jax
import jax.numpy as jnp
from jax.experimental import pallas as pl
from jax.experimental.pallas import tpu as pltpu

EPS = 1e-5
_LANE = 128
# Conservative block-footprint budget that fits every generation
# (v5e/v6e: 128 MiB physical VMEM; v7x: 64 MiB per TensorCore).
_VMEM_BUDGET_BYTES = 40 * 1024 * 1024


def _attn_kernel(g_ref, x_ref, wg_ref, wx_ref, wpsi_ref, b_ref, bpsi_ref,
                 o_ref):
    # g_ref: (F_g, TR)    x_ref: (F_l, TR)        o_ref: (F_l, TR)
    # wg_ref: (F_int, F_g)  wx_ref: (F_int, F_l)  (input dtype, MXU-native)
    # wpsi_ref: (F_int, 1) f32   b_ref: (F_int, 1) f32   bpsi_ref: (1, 1) f32
    #
    # Channel projections accumulate into a single f32 temporary
    # (f32 accumulation via preferred_element_type; no blanket upcast of the
    # big blocks).
    a = jnp.dot(wg_ref[...], g_ref[...],
                preferred_element_type=jnp.float32) + b_ref[...]
    a = a + jnp.dot(wx_ref[...], x_ref[...],
                    preferred_element_type=jnp.float32)
    a = jnp.maximum(a, 0.0)                                  # ReLU, (F_int, TR)

    # psi projection as weighted sublane reduction (avoids 1-wide MXU result).
    psi = jnp.sum(a * wpsi_ref[...], axis=0, keepdims=True) + bpsi_ref[...]
    psi = jax.nn.sigmoid(psi)                                # (1, TR) f32

    x_blk = x_ref[...]
    # Cast the (1, TR) gate down once; the (F_l, TR) multiply and store stay
    # at the input dtype (narrow writeback).
    o_ref[...] = (x_blk * psi.astype(x_blk.dtype)).astype(o_ref.dtype)


def _round_up(v, m):
    return ((v + m - 1) // m) * m


def _cdiv(a, b):
    return -(-a // b)


def _pick_spatial_tile(HW, B, F_g, F_l, F_int, in_bytes, out_bytes,
                       max_tile=2048):
    """Lane-dense spatial tile + explicit VMEM limit.

    TR = min(max_tile, round_up(HW, 128)), shrunk (in 128 steps) only until
    the double-buffered block footprint fits the cross-generation budget, and
    optionally nudged so B * steps is even (v7x megacore).
    """
    hw_ceil = _round_up(HW, _LANE)
    tr = min(_round_up(max(max_tile, _LANE), _LANE), hw_ceil)

    weights_bytes = F_int * (F_g + F_l) * in_bytes + (2 * F_int + 1) * 4

    def footprint(t):
        return (2 * F_g * t * in_bytes        # g blocks, double-buffered
                + 2 * F_l * t * in_bytes      # x blocks, double-buffered
                + 2 * F_l * t * out_bytes     # out blocks, double-buffered
                + F_int * t * 4               # f32 pre-activation temporary
                + 2 * weights_bytes)          # weight/bias buffers

    while tr > _LANE and footprint(tr) > _VMEM_BUDGET_BYTES:
        tr -= _LANE

    # Megacore (v7x has 2 TCs): prefer an even total step count when it costs
    # at most a halving of the tile (roofline is flat above ~512 lanes).
    steps = _cdiv(HW, tr)
    if (B * steps) % 2 == 1 or B * steps < 2:
        cand = tr - _LANE
        while cand >= max(_LANE, tr // 2):
            s = _cdiv(HW, cand)
            if (B * s) % 2 == 0 and B * s >= 2:
                tr = cand
                break
            cand -= _LANE

    vmem_limit = int(min(max(footprint(tr) + (4 << 20), 32 << 20), 56 << 20))
    return tr, vmem_limit


def attention_block_pallas(g, x, params, *, max_tile=2048):
    """g: (B, F_g, H, W) NCHW, x: (B, F_l, H, W) NCHW. Returns (B, F_l, H, W)."""
    B, F_g, H, W = g.shape
    _, F_l, _, _ = x.shape
    HW = H * W

    # Fold BN (inference) into conv weights/biases, channel-major orientation.
    def fold(w, gamma, beta, mean, var):
        s = gamma / jnp.sqrt(var + EPS)                 # (C_out,)
        return w * s[:, None], beta - mean * s          # (C_out,C_in), (C_out,)

    wg_eff, bg_eff = fold(params["wg"], *params["bn_g"])
    wx_eff, bx_eff = fold(params["wx"], *params["bn_x"])
    wpsi_eff, bpsi_eff = fold(params["wpsi"], *params["bn_psi"])
    F_int = wg_eff.shape[0]

    in_dtype = x.dtype
    # Projection weights at the input dtype (native MXU path, half the weight
    # HBM traffic for bf16); small psi weight / biases stay f32.
    wg_eff = wg_eff.astype(in_dtype)
    wx_eff = wx_eff.astype(in_dtype)
    b_relu = (bg_eff + bx_eff).reshape(F_int, 1).astype(jnp.float32)
    wpsi_col = wpsi_eff.reshape(1, F_int).T.astype(jnp.float32)   # (F_int, 1)
    bpsi2 = bpsi_eff.reshape(1, 1).astype(jnp.float32)

    # Free reshape: NCHW -> (B, C, H*W); spatial axis becomes the lane axis.
    # No padding: the cdiv grid + Pallas block masking handle the tail block.
    g3 = g.reshape(B, F_g, HW)
    x3 = x.reshape(B, F_l, HW)

    in_bytes = max(jnp.dtype(g.dtype).itemsize, jnp.dtype(in_dtype).itemsize)
    out_bytes = jnp.dtype(in_dtype).itemsize
    tr, vmem_limit = _pick_spatial_tile(HW, B, F_g, F_l, F_int,
                                        in_bytes, out_bytes, max_tile)

    grid = (B, _cdiv(HW, tr))

    out3 = pl.pallas_call(
        _attn_kernel,
        out_shape=jax.ShapeDtypeStruct((B, F_l, HW), in_dtype),
        grid_spec=pltpu.PrefetchScalarGridSpec(
            num_scalar_prefetch=0,
            grid=grid,
            in_specs=[
                # Squeeze the batch dim; kernel sees (C, TR) blocks.
                pl.BlockSpec((None, F_g, tr), lambda b, s: (b, 0, s)),
                pl.BlockSpec((None, F_l, tr), lambda b, s: (b, 0, s)),
                # Weights/biases: constant index map -> DMA'd once.
                pl.BlockSpec((F_int, F_g), lambda b, s: (0, 0)),
                pl.BlockSpec((F_int, F_l), lambda b, s: (0, 0)),
                pl.BlockSpec((F_int, 1), lambda b, s: (0, 0)),
                pl.BlockSpec((F_int, 1), lambda b, s: (0, 0)),
                pl.BlockSpec((1, 1), lambda b, s: (0, 0)),
            ],
            out_specs=pl.BlockSpec((None, F_l, tr), lambda b, s: (b, 0, s)),
        ),
        compiler_params=pltpu.CompilerParams(
            dimension_semantics=("parallel", "parallel"),
            vmem_limit_bytes=vmem_limit),
    )(g3, x3, wg_eff, wx_eff, wpsi_col, b_relu, bpsi2)

    return out3.reshape(B, F_l, H, W)


def init_params(key, F_g, F_l, F_int):
    ks = jax.random.split(key, 7)
    wg = jax.random.normal(ks[0], (F_int, F_g), jnp.float32) * (1.0 / F_g) ** 0.5
    wx = jax.random.normal(ks[1], (F_int, F_l), jnp.float32) * (1.0 / F_l) ** 0.5
    wpsi = jax.random.normal(ks[2], (1, F_int), jnp.float32) * (1.0 / F_int) ** 0.5

    def bn(k, c):
        k1, k2, k3, k4 = jax.random.split(k, 4)
        gamma = 1.0 + 0.1 * jax.random.normal(k1, (c,), jnp.float32)
        beta = 0.1 * jax.random.normal(k2, (c,), jnp.float32)
        mean = 0.1 * jax.random.normal(k3, (c,), jnp.float32)
        var = 1.0 + 0.1 * jax.random.uniform(k4, (c,), jnp.float32)
        return gamma, beta, mean, var

    return {
        "wg": wg, "wx": wx, "wpsi": wpsi,
        "bn_g": bn(ks[3], F_int),
        "bn_x": bn(ks[4], F_int),
        "bn_psi": bn(ks[5], 1),
    }


def reference(g, x, params):
    """Plain JAX reference (same BN-inference semantics)."""
    def conv_bn(inp, w, bnp):
        gamma, beta, mean, var = bnp
        y = jnp.einsum("bchw,oc->bohw", inp, w)
        s = gamma / jnp.sqrt(var + EPS)
        return y * s[None, :, None, None] + (beta - mean * s)[None, :, None, None]

    g1 = conv_bn(g, params["wg"], params["bn_g"])
    x1 = conv_bn(x, params["wx"], params["bn_x"])
    a = jnp.maximum(g1 + x1, 0.0)
    psi = jax.nn.sigmoid(conv_bn(a, params["wpsi"], params["bn_psi"]))
    return x * psi


if __name__ == "__main__":
    B, F_g, F_l, F_int, H, W = 2, 4, 4, 32, 16, 16
    key = jax.random.PRNGKey(0)
    kg, kx, kp = jax.random.split(key, 3)
    g = jax.random.normal(kg, (B, F_g, H, W), jnp.float32)
    x = jax.random.normal(kx, (B, F_l, H, W), jnp.float32)
    params = init_params(kp, F_g, F_l, F_int)

    out = attention_block_pallas(g, x, params)
    out = jax.block_until_ready(out)

    ref = reference(g, x, params)
    assert out.shape == (B, F_l, H, W)
    assert jnp.allclose(out, ref, atol=1e-4, rtol=1e-4)
    print("KERNEL_OK")
</pallas_src>

<mosaic_0001>
module attributes {stable_mosaic.version = 11 : i64} {
  func.func @_attn_kernel(%arg0: i32, %arg1: i32, %arg2: memref<1x4x256xf32, #tpu.memory_space<vmem>>, %arg3: memref<1x4x256xf32, #tpu.memory_space<vmem>>, %arg4: memref<32x4xf32, #tpu.memory_space<vmem>>, %arg5: memref<32x4xf32, #tpu.memory_space<vmem>>, %arg6: memref<32x1xf32, #tpu.memory_space<vmem>>, %arg7: memref<32x1xf32, #tpu.memory_space<vmem>>, %arg8: memref<1x1xf32, #tpu.memory_space<vmem>>, %arg9: memref<1x4x256xf32, #tpu.memory_space<vmem>>) attributes {dimension_semantics = [#tpu.dimension_semantics<parallel>, #tpu.dimension_semantics<parallel>], iteration_bounds = array<i64: 2, 1>, scalar_prefetch = 0 : i64, scratch_operands = 0 : i64, tpu.core_type = #tpu.core_type<tc>, window_params = [{transform_indices = @transform_0, window_bounds = array<i64: 1, 4, 256>}, {transform_indices = @transform_1, window_bounds = array<i64: 1, 4, 256>}, {pipeline_mode = #tpu.pipeline_mode<synchronous>, transform_indices = @transform_2, window_bounds = array<i64: 32, 4>}, {pipeline_mode = #tpu.pipeline_mode<synchronous>, transform_indices = @transform_3, window_bounds = array<i64: 32, 4>}, {pipeline_mode = #tpu.pipeline_mode<synchronous>, transform_indices = @transform_4, window_bounds = array<i64: 32, 1>}, {pipeline_mode = #tpu.pipeline_mode<synchronous>, transform_indices = @transform_5, window_bounds = array<i64: 32, 1>}, {pipeline_mode = #tpu.pipeline_mode<synchronous>, transform_indices = @transform_6, window_bounds = array<i64: 1, 1>}, {transform_indices = @transform_7, window_bounds = array<i64: 1, 4, 256>}]} {
    %c0 = arith.constant 0 : index
    %c0_0 = arith.constant 0 : index
    %0 = vector.load %arg4[%c0, %c0_0] : memref<32x4xf32, #tpu.memory_space<vmem>>, vector<32x4xf32>
    %c0_1 = arith.constant 0 : index
    %c0_2 = arith.constant 0 : index
    %c0_3 = arith.constant 0 : index
    %1 = vector.load %arg2[%c0_1, %c0_2, %c0_3] : memref<1x4x256xf32, #tpu.memory_space<vmem>>, vector<1x4x256xf32>
    %2 = vector.shape_cast %1 : vector<1x4x256xf32> to vector<4x256xf32>
    %cst = arith.constant dense<0.000000e+00> : vector<32x256xf32>
    %3 = tpu.matmul %0, %2, %cst {dimension_numbers = #tpu.dot_dimension_numbers<[1], [0], [0], [1], [0, 0, 1, 1], [], []>} : vector<32x4xf32>, vector<4x256xf32>, vector<32x256xf32> -> vector<32x256xf32>
    %c0_4 = arith.constant 0 : index
    %c0_5 = arith.constant 0 : index
    %4 = vector.load %arg7[%c0_4, %c0_5] : memref<32x1xf32, #tpu.memory_space<vmem>>, vector<32x1xf32>
    %5 = vector.broadcast %4 : vector<32x1xf32> to vector<32x256xf32>
    %6 = arith.addf %3, %5 : vector<32x256xf32>
    %c0_6 = arith.constant 0 : index
    %c0_7 = arith.constant 0 : index
    %7 = vector.load %arg5[%c0_6, %c0_7] : memref<32x4xf32, #tpu.memory_space<vmem>>, vector<32x4xf32>
    %c0_8 = arith.constant 0 : index
    %c0_9 = arith.constant 0 : index
    %c0_10 = arith.constant 0 : index
    %8 = vector.load %arg3[%c0_8, %c0_9, %c0_10] : memref<1x4x256xf32, #tpu.memory_space<vmem>>, vector<1x4x256xf32>
    %9 = vector.shape_cast %8 : vector<1x4x256xf32> to vector<4x256xf32>
    %cst_11 = arith.constant dense<0.000000e+00> : vector<32x256xf32>
    %10 = tpu.matmul %7, %9, %cst_11 {dimension_numbers = #tpu.dot_dimension_numbers<[1], [0], [0], [1], [0, 0, 1, 1], [], []>} : vector<32x4xf32>, vector<4x256xf32>, vector<32x256xf32> -> vector<32x256xf32>
    %11 = arith.addf %6, %10 : vector<32x256xf32>
    %cst_12 = arith.constant 0.000000e+00 : f32
    %12 = vector.broadcast %cst_12 : f32 to vector<32x256xf32>
    %13 = arith.maximumf %11, %12 : vector<32x256xf32>
    %c0_13 = arith.constant 0 : index
    %c0_14 = arith.constant 0 : index
    %14 = vector.load %arg6[%c0_13, %c0_14] : memref<32x1xf32, #tpu.memory_space<vmem>>, vector<32x1xf32>
    %15 = vector.broadcast %14 : vector<32x1xf32> to vector<32x256xf32>
    %16 = arith.mulf %13, %15 : vector<32x256xf32>
    %cst_15 = arith.constant dense<0.000000e+00> : vector<256xf32>
    %17 = vector.multi_reduction <add>, %16, %cst_15 [0] : vector<32x256xf32> to vector<256xf32>
    %18 = vector.shape_cast %17 : vector<256xf32> to vector<1x256xf32>
    %c0_16 = arith.constant 0 : index
    %c0_17 = arith.constant 0 : index
    %19 = vector.load %arg8[%c0_16, %c0_17] : memref<1x1xf32, #tpu.memory_space<vmem>>, vector<1x1xf32>
    %20 = vector.broadcast %19 : vector<1x1xf32> to vector<1x256xf32>
    %21 = arith.addf %18, %20 : vector<1x256xf32>
    %22 = arith.negf %21 : vector<1x256xf32>
    %23 = math.exp %22 : vector<1x256xf32>
    %cst_18 = arith.constant 1.000000e+00 : f32
    %24 = vector.broadcast %cst_18 : f32 to vector<1x256xf32>
    %25 = arith.addf %24, %23 : vector<1x256xf32>
    %26 = arith.divf %24, %25 : vector<1x256xf32>
    %c0_19 = arith.constant 0 : index
    %c0_20 = arith.constant 0 : index
    %c0_21 = arith.constant 0 : index
    %27 = vector.load %arg3[%c0_19, %c0_20, %c0_21] : memref<1x4x256xf32, #tpu.memory_space<vmem>>, vector<1x4x256xf32>
    %28 = vector.shape_cast %27 : vector<1x4x256xf32> to vector<4x256xf32>
    %29 = vector.broadcast %26 : vector<1x256xf32> to vector<4x256xf32>
    %30 = arith.mulf %28, %29 : vector<4x256xf32>
    %c0_22 = arith.constant 0 : index
    %c0_23 = arith.constant 0 : index
    %c0_24 = arith.constant 0 : index
    %31 = vector.load %arg9[%c0_22, %c0_23, %c0_24] : memref<1x4x256xf32, #tpu.memory_space<vmem>>, vector<1x4x256xf32>
    %32 = vector.shape_cast %31 : vector<1x4x256xf32> to vector<4x256xf32>
    %33 = vector.shape_cast %30 : vector<4x256xf32> to vector<1x4x256xf32>
    tpu.vector_store %arg9[%c0_22, %c0_23, %c0_24], %33 {strides = array<i32>} : memref<1x4x256xf32, #tpu.memory_space<vmem>>, vector<1x4x256xf32>,
    return
  }
  func.func @transform_0(%arg0: i32, %arg1: i32) -> (i32, i32, i32) {
    %c0_i32 = arith.constant 0 : i32
    %c0_i32_0 = arith.constant 0 : i32
    return %arg0, %c0_i32, %arg1 : i32, i32, i32
  }
  func.func @transform_1(%arg0: i32, %arg1: i32) -> (i32, i32, i32) {
    %c0_i32 = arith.constant 0 : i32
    %c0_i32_0 = arith.constant 0 : i32
    return %arg0, %c0_i32, %arg1 : i32, i32, i32
  }
  func.func @transform_2(%arg0: i32, %arg1: i32) -> (i32, i32) {
    %c0_i32 = arith.constant 0 : i32
    %c0_i32_0 = arith.constant 0 : i32
    %c0_i32_1 = arith.constant 0 : i32
    return %c0_i32, %c0_i32_0 : i32, i32
  }
  func.func @transform_3(%arg0: i32, %arg1: i32) -> (i32, i32) {
    %c0_i32 = arith.constant 0 : i32
    %c0_i32_0 = arith.constant 0 : i32
    %c0_i32_1 = arith.constant 0 : i32
    return %c0_i32, %c0_i32_0 : i32, i32
  }
  func.func @transform_4(%arg0: i32, %arg1: i32) -> (i32, i32) {
    %c0_i32 = arith.constant 0 : i32
    %c0_i32_0 = arith.constant 0 : i32
    %c0_i32_1 = arith.constant 0 : i32
    return %c0_i32, %c0_i32_0 : i32, i32
  }
  func.func @transform_5(%arg0: i32, %arg1: i32) -> (i32, i32) {
    %c0_i32 = arith.constant 0 : i32
    %c0_i32_0 = arith.constant 0 : i32
    %c0_i32_1 = arith.constant 0 : i32
    return %c0_i32, %c0_i32_0 : i32, i32
  }
  func.func @transform_6(%arg0: i32, %arg1: i32) -> (i32, i32) {
    %c0_i32 = arith.constant 0 : i32
    %c0_i32_0 = arith.constant 0 : i32
    %c0_i32_1 = arith.constant 0 : i32
    return %c0_i32, %c0_i32_0 : i32, i32
  }
  func.func @transform_7(%arg0: i32, %arg1: i32) -> (i32, i32, i32) {
    %c0_i32 = arith.constant 0 : i32
    %c0_i32_0 = arith.constant 0 : i32
    return %arg0, %c0_i32, %arg1 : i32, i32, i32
  }
}

</mosaic_0001>

<bundles_post_ra>
// kernel: tpu_custom_call.1
= control target key start
LH: loop header
LB: loop body
LE: loop exit
PB: predicated region body
PF: predicated region fallthrough
CT: control target
= control target key end

     0   :  { %s1192_s0 = inlined_call_operand.vmem [shape: f32[2,4,256], index: 0, kind: input, shape index: {}]   ;;  %s1193_s1 = inlined_call_operand.vmem [shape: f32[2,4,256], index: 1, kind: input, shape index: {}]   ;;  %s1194_s2 = inlined_call_operand.vmem [shape: f32[32,4], index: 2, kind: input, shape index: {}]   ;;  %s1195_s3 = inlined_call_operand.vmem [shape: f32[32,4], index: 3, kind: input, shape index: {}]   ;;  %s1196_s4 = inlined_call_operand.vmem [shape: f32[32,1], index: 4, kind: input, shape index: {}]   ;;  %s1197_s5 = inlined_call_operand.vmem [shape: f32[32,1], index: 5, kind: input, shape index: {}]   ;;  %s1198_s6 = inlined_call_operand.<no memory space> [shape: f32[1,1], index: 6, kind: input, shape index: {}]   ;;  %s1199_s7 = inlined_call_operand.hbm [shape: f32[2,4,256], index: 7, kind: output, shape index: {}]  }
   0x1   :  { %v12_v0 = vstv %s1198_s6 }
   0x2   :  { %13 = vst [vmem:[#allocation2] sm:$0x1] %v12_v0 }
   0x3   :  { %14 = vsyncpa [#allocation4], 0 }
   0x4   :  { %16 = vsyncpa [#allocation4 + $0x1], 0  ;;  %s1028_s26 = smov 0   ;;  %s1030_s27 = smov 0  }
   0x5   :  { %s1032_s28 = smov 0   ;;  %s1034_s29 = smov 0  }
   0x6   :  { %s1036_s30 = smov 0   ;;  %s1038_s8 = smov 0  }
   0x7 LB: > { %s803_s6 = sadd.s32 4294967295, %s980_s8   ;;  %s804_s9 = sadd.s32 4294967294, %s980_s8   ;;  %s980_s8 = sphi %s1038_s8, %s22_s8   ;;  %s976_s30 = sphi %s1036_s30, %s1206_s30   ;;  %s972_s29 = sphi %s1034_s29, %s1205_s29   ;;  %s968_s28 = sphi %s1032_s28, %s1204_s28   ;;  %s964_s27 = sphi %s1030_s27, %s1203_s27   ;;  %s960_s26 = sphi %s1028_s26, %s1202_s26  }
   0x8   : > { %s34_s10 = sadd.s32 1, %s976_s30  ;;  %s204_s11 = sadd.s32 1, %s968_s28 }
   0x9   : > { %p36_p0 = scmp.ge.s32.totalorder %s34_s10, 2  ;;  %p214_p1 = scmp.ne.s32.totalorder %s968_s28, %s964_s27 }
   0xa   : > { %p215_p2 = scmp.eq.s32.totalorder %s803_s6, 1  ;;  %p220_p3 = scmp.ne.s32.totalorder %s964_s27, %s960_s26 }
   0xb   : > { %s1208_s10 = smov (%p36_p0, %s34_s10), 0  ;;  %p221_p5 = scmp.eq.s32.totalorder %s804_s9, 1 }
   0xc   : > { %p1068_p4 = por %p215_p2, %p214_p1  ;;  %s199_s13 = ssub.s32 %s976_s30, %s1208_s10 }
   0xd   : > { %p807_p6 = scmp.ge.s32.totalorder %s980_s8, 1  ;;  %p202_p7 = scmp.eq.s32.totalorder %s199_s13, 0 }
   0xe   : > { %p1075_p8 = por %p221_p5, %p220_p3  ;;  %p280_p9 = scmp.lt.s32.totalorder %s980_s8, 3 }
   0xf   : > { %s1081_s15 = scalar_select %p202_p7, %s968_s28, %s204_s11  }
  0x10   : > { %p281_p10 = pnand %p807_p6, %p280_p9 }
  0x11   : > { %p326_p11 = scmp.lt.s32.totalorder (!%p281_p10), %s972_s29, 1  ;;  %s322_s11 = sand.u32 (!%p281_p10), 1, %s964_s27  }
  0x12   : > { %284 = sbr.rel (%p281_p10) target bundleno = 313 (0x139), region = 48  ;;  %s808_s13 = sshll.u32 (!%p281_p10), %s322_s11, 3 }
  0x13   : > { %s834_s17 = sshll.u32 (!%p281_p10), %s972_s29, 7  ;;  %s324_s18 = scalar_lea.vmem (!%p281_p10), [#allocation3], %s808_s13 }
  0x14   : > { %s693_s22 = scalar_lea.sflag (!%p281_p10), [#allocation4], %s322_s11 }
  0x17   : > { %v982_v1 = vmov 0.0   ;;  %s327_s16 = scalar_select %p326_p11, %s972_s29, 1  ;;  %v983_v2 = vmov 0   ;;  %v351_v3 = vld [vmem:[%s1197_s5] sm:$0xff]  ;;  %v353_v4 = vld [vmem:[%s1197_s5 + $0x10] sm:$0xff]  ;;  %v352_v5 = vld [vmem:[%s1197_s5 + $0x8] sm:$0xff] }
  0x18   : > { %459 = vmatprep.mubr.f32.mxu0 %v982_v1  ;;  %571 = vmatprep.mubr.f32.mxu1 %v982_v1  ;;  %v354_v6 = vld [vmem:[%s1197_s5 + $0x18] sm:$0xff]  ;;  %vm390_vm0 = vcmask 1043456   ;;  %v346_v11 = vld [vmem:[%s1194_s2] sm:$0xff]  ;;  %vm377_vm1 = vcmask 31744   ;;  %v613_v14 = vld [vmem:[%s1196_s4 + $0x8] sm:$0xff] }
  0x19   : > { %892 = vset.pattern.permute.xlu0 %v983_v2  ;;  %893 = vset.pattern.permute.xlu1 %v983_v2  ;;  %s832_s21 = sshll.u32 %s327_s16, 3  ;;  %v484_v12 = vld [vmem:[%s1195_s3] sm:$0xff]  ;;  %v347_v15 = vld [vmem:[%s1194_s2 + $0x8] sm:$0xff]  ;;  %v614_v17 = vld [vmem:[%s1196_s4 + $0x10] sm:$0xff]  ;;  %s709_s16 = sshll.u32 %s324_s18, 4  ;;  %s710_s16 = int_to_ptr.vmem [resolvable:$true] %s709_s16 }
  0x1a   : > { %357 = vperm.xlu0 %892, %v351_v3   ;;  %367 = vperm.xlu1 %893, %v353_v4   ;;  %s333_s24 = scalar_lea.vmem %s1192_s0, %s832_s21  ;;  %s343_s9 = scalar_lea.vmem %s1193_s1, %s832_s21  ;;  %v612_v13 = vld [vmem:[%s1196_s4] sm:$0xff]  ;;  %v485_v16 = vld [vmem:[%s1195_s3 + $0x8] sm:$0xff]  ;;  %v615_v18 = vld [vmem:[%s1196_s4 + $0x18] sm:$0xff] }
  0x1b   : > { %v350_v7 = vld [vmem:[%s333_s24] sm:$0xff]  ;;  %v348_v19 = vld [vmem:[%s1194_s2 + $0x10] sm:$0xff]  ;;  %v349_v22 = vld [vmem:[%s1194_s2 + $0x18] sm:$0xff]  ;;  %s707_s21 = scalar_lea.hbm %s1199_s7, %s834_s17  ;;  %s904_s23 = scalar_lea.vmem %s710_s16, 128 }
  0x1c   : > { %v1103_v8 = vld [vmem:[%s343_s9] sm:$0xff]  ;;  %v376_v9 = vcombine.high %v350_v7, %v350_v7  ;;  %v486_v20 = vld [vmem:[%s1195_s3 + $0x10] sm:$0xff]  ;;  %v487_v23 = vld [vmem:[%s1195_s3 + $0x18] sm:$0xff]  ;;  %p905_p12 = scmp.ne.s32.totalorder %s710_s16, %s904_s23  ;;  %s984_s24 = smov [#allocation3]  }
  0x1d   : > { %v490_v10 = vcombine.high %v1103_v8, %v1103_v8  ;;  %v662_v21 = vld [vmem:[#allocation2] sm:$0x1]  ;;  %s908_s25 = sshll.u32 %s984_s24, 4  ;;  %s909_s25 = int_to_ptr.vmem [resolvable:$false] %s908_s25 }
  0x1e   : > { %362 = vperm.xlu0 %892, %v352_v5   ;;  %372 = vperm.xlu1 %893, %v354_v6   ;;  %p906_p13 = pnand %p905_p12, %p1068_p4  ;;  %s910_s29 = scalar_lea.vmem %s909_s25, 256 }
  0x1f   : > { %813 = vmatprep.subr.msk.mxu0 %vm390_vm0, %v376_v9  ;;  %819 = vmatprep.subr.msk.mxu1 %vm390_vm0, %v490_v10  ;;  %p911_p1 = scmp.lt.s32.totalorder %s710_s16, %s909_s25  ;;  %p912_p2 = scmp.lt.s32.totalorder %s910_s29, %s904_s23 }
  0x20   : > { %814 = vmatpush1.msk.msra.mxu0 %vm390_vm0, %v350_v7  ;;  %820 = vmatpush1.msk.msra.mxu1 %vm390_vm0, %v1103_v8  ;;  %p907_p0 = pneg %p906_p13 }
  0x21   : > { %815 = vmatmul.mubr.msk.f32.vlgmr.msra.gmra.mxu0 %vm377_vm1, %v346_v11  ;;  %821 = vmatmul.mubr.msk.f32.vlgmr.msra.gmra.mxu1 %vm377_vm1, %v484_v12  ;;  %p913_p3 = por %p912_p2, %p911_p1 }
  0x22   : > { %465 = vmatprep.mubr.f32.mxu0 %v982_v1  ;;  %577 = vmatprep.mubr.f32.mxu1 %v982_v1 }
  0x23   : > { %618 = vperm.xlu0 %892, %v612_v13   ;;  %623 = vperm.xlu1 %893, %v613_v14   ;;  %p914_p5 = pnand %p913_p3, %p907_p0 }
  0x25   : > { %816 = vmatmul.mubr.msk.f32.gmra.mxu0 %vm377_vm1, %v347_v15  ;;  %822 = vmatmul.mubr.msk.f32.gmra.mxu1 %vm377_vm1, %v485_v16 }
  0x26   : > { %471 = vmatprep.mubr.f32.mxu0 %v982_v1  ;;  %583 = vmatprep.mubr.f32.mxu1 %v982_v1 }
  0x27   : > { %628 = vperm.xlu0 %892, %v614_v17   ;;  %633 = vperm.xlu1 %893, %v615_v18  }
  0x29   : > { %817 = vmatmul.mubr.msk.f32.gmra.mxu0 %vm377_vm1, %v348_v19  ;;  %823 = vmatmul.mubr.msk.f32.gmra.mxu1 %vm377_vm1, %v486_v20 }
  0x2a   : > { %477 = vmatprep.mubr.f32.mxu0 %v982_v1  ;;  %589 = vmatprep.mubr.f32.mxu1 %v982_v1 }
  0x2b   : > { %665 = vperm.xlu0 %892, %v662_v21   ;;  %v668_v21 = vlaneseq }
  0x2d   : > { %818 = vmatmul.mubr.msk.f32.gmra.mxu0 %vm377_vm1, %v349_v22  ;;  %824 = vmatmul.mubr.msk.f32.gmra.mxu1 %vm377_vm1, %v487_v23 }
  0x95   : > { %v358_v24 = vpop.permute.xlu0 %357  ;;  %v368_v27 = vpop.permute.xlu1 %367 }
  0x99   : > { %v363_v30 = vpop.permute.xlu0 %362  ;;  %v373_v38 = vpop.permute.xlu1 %372 }
  0x9e   : > { %v619_v44 = vpop.permute.xlu0 %618  ;;  %v624_v58 = vpop.permute.xlu1 %623 }
  0xa2   : > { %v629_v0 = vpop.permute.xlu0 %628  ;;  %v634_v15 = vpop.permute.xlu1 %633 }
  0xe1   : > { %v461_v25 = vpop.f32.mrf.mxu0  ;;  %v573_v26 = vpop.f32.mrf.mxu1 }
  0xe2   : > { %v462_v31 = vadd.f32 %v461_v25, %v358_v24 }
  0xe3   : > { %v463_v28 = vpop.f32.mrf.mxu0  ;;  %v575_v29 = vpop.f32.mrf.mxu1 }
  0xe4   : > { %v464_v34 = vadd.f32 %v463_v28, %v358_v24  ;;  %v596_v41 = vadd.f32 %v573_v26, %v462_v31  ;;  %v669_v26 = vshrl.u32 %v668_v21, 7 }
  0xe5   : > { %v467_v32 = vpop.f32.mrf.mxu0  ;;  %v579_v33 = vpop.f32.mrf.mxu1 }
  0xe6   : > { %v468_v35 = vadd.f32 %v467_v32, %v363_v30  ;;  %v597_v45 = vadd.f32 %v575_v29, %v464_v34  ;;  %v604_v54 = vmax.f32 %v596_v41, 0.0  ;;  %v670_v31 = vsub.s32 0, %v669_v26 }
  0xe7   : > { %v469_v36 = vpop.f32.mrf.mxu0  ;;  %v581_v37 = vpop.f32.mrf.mxu1 }
  0xe8   : > { %v598_v39 = vadd.f32 %v579_v33, %v468_v35  ;;  %v470_v40 = vadd.f32 %v469_v36, %v363_v30  ;;  %v605_v57 = vmax.f32 %v597_v45, 0.0  ;;  %v636_v4 = vmul.f32 %v619_v44, %v604_v54  ;;  %v666_v33 = vpop.permute.xlu0 %665 }
  0xe9   : > { %v473_v42 = vpop.f32.mrf.mxu0  ;;  %v585_v43 = vpop.f32.mrf.mxu1 }
  0xea   : > { %v599_v46 = vadd.f32 %v581_v37, %v470_v40  ;;  %v474_v47 = vadd.f32 %v473_v42, %v368_v27  ;;  %v606_v48 = vmax.f32 %v598_v39, 0.0  ;;  %v637_v9 = vmul.f32 %v619_v44, %v605_v57 }
  0xeb   : > { %v475_v49 = vpop.f32.mrf.mxu0  ;;  %v587_v50 = vpop.f32.mrf.mxu1  ;;  %v671_v37 = vrot.slane %v666_v33, %v670_v31 }
  0xec   : > { %v607_v51 = vmax.f32 %v599_v46, 0.0  ;;  %v600_v52 = vadd.f32 %v585_v43, %v474_v47  ;;  %v476_v53 = vadd.f32 %v475_v49, %v368_v27  ;;  %v638_v61 = vmul.f32 %v624_v58, %v606_v48 }
  0xed   : > { %v479_v55 = vpop.f32.mrf.mxu0  ;;  %v591_v56 = vpop.f32.mrf.mxu1 }
  0xee   : > { %v608_v59 = vmax.f32 %v600_v52, 0.0  ;;  %v601_v60 = vadd.f32 %v587_v50, %v476_v53  ;;  %v480_v62 = vadd.f32 %v479_v55, %v373_v38  ;;  %v639_v1 = vmul.f32 %v624_v58, %v607_v51 }
  0xef   : > { %v481_v63 = vpop.f32.mrf.mxu0  ;;  %v593_v7 = vpop.f32.mrf.mxu1  ;;  %v644_v12 = vadd.f32 %v638_v61, %v636_v4 }
  0xf0   : > { %v609_v2 = vmax.f32 %v601_v60, 0.0  ;;  %v482_v3 = vadd.f32 %v481_v63, %v373_v38  ;;  %v640_v5 = vmul.f32 %v629_v0, %v608_v59  ;;  %v602_v6 = vadd.f32 %v591_v56, %v480_v62 }
  0xf1   : > { %v653_v14 = vadd.f32 %v639_v1, %v637_v9 }
  0xf2   : > { %v641_v10 = vmul.f32 %v629_v0, %v609_v2  ;;  %v603_v11 = vadd.f32 %v593_v7, %v482_v3  ;;  %v610_v13 = vmax.f32 %v602_v6, 0.0  ;;  %v645_v17 = vadd.f32 %v644_v12, %v640_v5 }
  0xf4   : > { %v611_v16 = vmax.f32 %v603_v11, 0.0  ;;  %v642_v18 = vmul.f32 %v634_v15, %v610_v13  ;;  %v654_v19 = vadd.f32 %v653_v14, %v641_v10 }
  0xf6   : > { %v643_v20 = vmul.f32 %v634_v15, %v611_v16  ;;  %v646_v22 = vadd.f32 %v645_v17, %v642_v18 }
  0xf8   : > { %v655_v23 = vadd.f32 %v654_v19, %v643_v20  ;;  %v647_v24 = vrot.slane %v646_v22, 4 }
  0xfa   : > { %v656_v25 = vrot.slane %v655_v23, 4  ;;  %v648_v27 = vadd.f32 %v647_v24, %v646_v22 }
  0xfc   : > { %v657_v28 = vadd.f32 %v656_v25, %v655_v23  ;;  %v649_v29 = vrot.slane %v648_v27, 2 }
  0xfe   : > { %v658_v30 = vrot.slane %v657_v28, 2  ;;  %v650_v32 = vadd.f32 %v649_v29, %v648_v27 }
 0x100   : > { %v659_v34 = vadd.f32 %v658_v30, %v657_v28  ;;  %v651_v35 = vrot.slane %v650_v32, 1 }
 0x102   : > { %v660_v36 = vrot.slane %v659_v34, 1  ;;  %v652_v38 = vadd.f32 %v651_v35, %v650_v32 }
 0x104   : > { %v661_v39 = vadd.f32 %v660_v36, %v659_v34  ;;  %v672_v40 = vadd.f32 %v671_v37, %v652_v38 }
 0x106   : > { %v673_v41 = vadd.f32 %v671_v37, %v661_v39  ;;  %v825_v42 = vmul.f32 -1.442695, %v672_v40 }
 0x108   : > { %v826_v43 = vmul.f32 -1.442695, %v673_v41  ;;  %896 = vpow2.f32 %v825_v42 }
 0x10a   : > { %898 = vpow2.f32 %v826_v43 }
 0x115   : > { %v897_v44 = vpop.eup %896 }
 0x116   : > { %v680_v46 = vadd.f32 1.0, %v897_v44 }
 0x117   : > { %v899_v45 = vpop.eup %898 }
 0x118   : > { %v681_v47 = vadd.f32 1.0, %v899_v45  ;;  %900 = vrcp.f32 %v680_v46 }
 0x11a   : > { %902 = vrcp.f32 %v681_v47 }
 0x125   : > { %v901_v48 = vpop.eup %900 }
 0x127   : > { %v903_v49 = vpop.eup %902 }
 0x128   : > { %v688_v50 = vcombine.low %v901_v48, %v903_v49 }
 0x12a   : > { %v690_v51 = vmul.f32 %v688_v50, %v1103_v8 }
 0x12c   : > { %691 = vst [vmem:[%s324_s18] sm:$0xff] %v690_v51 }
 0x12d   : > { %917 = shalt.err (!%p914_p5)
}
 0x12e   : > { %s918_s6 = scalar_lea.hbm %s707_s21, 128  ;;  %s922_s13 = scalar_lea.hbm %s1199_s7, 256 }
 0x12f   : > { %p919_p6 = scmp.ne.s32.totalorder %s707_s21, %s918_s6  ;;  %p923_p10 = scmp.lt.s32.totalorder %s707_s21, %s1199_s7 }
 0x130   : > { %p924_p11 = scmp.lt.s32.totalorder %s922_s13, %s918_s6 }
 0x131   : > { %p920_p7 = pnand %p919_p6, %p1068_p4 }
 0x132   : > { %p925_p12 = por %p924_p11, %p923_p10 }
 0x133   : > { %p921_p9 = pneg %p920_p7 }
 0x135   : > { %p926_p13 = pnand %p925_p12, %p921_p9 }
 0x137   : > { %929 = shalt.err (!%p926_p13)
}
 0x138   : > { %835 = dma.vmem_to_hbm [thread:$0]  (%p1068_p4), %s710_s16, 128, %s707_s21, %s693_s22  }
 0x139 PF: > { %p841_p0 = scmp.ge.s32.totalorder %s980_s8, 2  ;;  %s721_s19 = sand.u32 1, %s960_s26  }
 0x13a   : > { %s722_s20 = scalar_lea.sflag [#allocation4], %s721_s19 }
 0x13b   : > { %p838_p1 = pnand %p841_p0, %p1075_p8 }
 0x13d   : > { %p839_p2 = pneg %p838_p1 }
 0x13f   : > { %955 = dma.done.wait (%p839_p2), %s722_s20, 128  }
 0x140   : > { %957 = vsyncadd (%p839_p2), %s722_s20, 4294967168  ;;  %s22_s8 = sadd.s32 1, %s980_s8   ;;  %s1202_s26 = smov %s964_s27 }
 0x141   : > { %p19_p3 = scmp.ge.s32.totalorder %s22_s8, 4   ;;  %s1203_s27 = smov %s968_s28 }
 0x142   : > { %s1204_s28 = smov %s1081_s15  ;;  %s1205_s29 = smov %s976_s30 }
 0x143   : > { %s1206_s30 = smov %s1208_s10  ;;  %21 = sbr.rel (!%p19_p3) target bundleno = 7 (0x7), region = 86 }
 0x148   :  { %727 = vsyncpa [#allocation4], 1 }
 0x149   :  { %729 = vsyncpa [#allocation4 + $0x1], 1 }

</bundles_post_ra>
